<compile_context>
chip_gen: v7x
topology: tpu7x:2x2x1
jax: 0.10.0
libtpu: 0.0.40
codegen_flags: <defaults>
</compile_context>

<pallas_src>
import functools

import jax
import jax.numpy as jnp
from jax.experimental import pallas as pl
from jax.experimental.pallas import tpu as pltpu

LEAKY_SLOPE = 0.01  # nn.LeakyReLU() default negative_slope
LANE = 128
SUBLANE = 8


def _round_up(n, m):
    return ((n + m - 1) // m) * m


def _cdiv(a, b):
    return (a + b - 1) // b


def dnn6_kernel(x_ref, w_ref, b_ref, out_ref, *, n_layers, in_size, out_size,
                compute_dtype):
    """Fused forward: 6x (Linear -> LeakyReLU) then final Linear on one batch tile.

    x_ref:   (bb, in_size)        activation tile (f32, unpadded feature dim)
    w_ref:   (n_layers, 128, 128) packed, zero-padded weight slab (VMEM-resident)
    b_ref:   (n_layers, 1, 128)   packed, zero-padded f32 bias slab (VMEM-resident)
    out_ref: (bb, out_size)       narrow output tile (only the useful lanes)
    """
    h = x_ref[...]
    for i in range(n_layers):  # unrolled at trace time (7 layers)
        # First layer contracts only the live rows of the padded weight tile.
        # (in_size is a multiple of 8 sublanes -> static slice is copy-free;
        #  padded rows beyond in_size are zero anyway.)
        w = w_ref[i, :in_size, :] if i == 0 else w_ref[i]
        y = jnp.dot(h.astype(compute_dtype), w,
                    preferred_element_type=jnp.float32) + b_ref[i]
        # LeakyReLU (slope < 1): max(y, slope*y) == where(y>0, y, slope*y)
        h = jnp.maximum(y, LEAKY_SLOPE * y) if i < n_layers - 1 else y
    # Narrow store: only out_size lanes go back to HBM (masked vst, 16x fewer bytes).
    out_ref[...] = h[:, :out_size].astype(out_ref.dtype)


def _choose_batch_tiling(batch, block_batch):
    """Pick (bb, pb) so that padding per call is tiny and the grid still has a few
    steps for pipelining / v7x dual-TC sharding, without shrinking tiles below ~256
    rows just to add steps."""
    n_tiles = _cdiv(batch, block_batch)
    n_tiles = max(n_tiles, min(4, max(1, batch // 256)))
    bb = _round_up(_cdiv(batch, n_tiles), SUBLANE)
    pb = _round_up(batch, bb)
    return bb, pb


def dnn6_forward(x, params, *, block_batch=1024, param_dtype=jnp.float32):
    """x: (B, input_size); params: list of (W (in,out), b (out,)) in f32.

    Weights are stored (in_features, out_features), i.e. transposed relative to
    PyTorch nn.Linear (out, in), so the kernel computes x @ W + b.
    param_dtype=jnp.bfloat16 selects the bf16-MXU path (f32 accumulation, f32 bias);
    recommended default on v5e/v6e per the perf review.
    """
    n_layers = len(params)
    in_size = params[0][0].shape[0]
    out_size = params[-1][0].shape[1]
    assert in_size <= LANE and out_size <= LANE
    assert all(w.shape[0] <= LANE and w.shape[1] <= LANE for w, _ in params)

    # --- pack all layers into two lane-padded slabs (2 DMA descriptors total) ---
    # Zero padding is exact: padded output columns get 0*x + 0 bias = 0, and
    # LeakyReLU(0) = 0, so they contribute nothing to the next layer.
    w_slab = jnp.zeros((n_layers, LANE, LANE), param_dtype)
    b_slab = jnp.zeros((n_layers, 1, LANE), jnp.float32)
    for i, (w, b) in enumerate(params):
        w_slab = w_slab.at[i, : w.shape[0], : w.shape[1]].set(w.astype(param_dtype))
        b_slab = b_slab.at[i, 0, : b.shape[-1]].set(b.reshape(-1).astype(jnp.float32))

    # --- batch tiling (no feature padding; minimal batch padding) ---
    batch = x.shape[0]
    bb, pb = _choose_batch_tiling(batch, block_batch)
    x_in = x.astype(jnp.float32)
    if pb != batch:  # pad at most 8*n_tiles rows; avoid any copy when not needed
        x_in = jnp.zeros((pb, in_size), jnp.float32).at[:batch].set(x_in)

    grid = (pb // bb,)
    kernel = functools.partial(dnn6_kernel, n_layers=n_layers, in_size=in_size,
                               out_size=out_size, compute_dtype=param_dtype)

    y = pl.pallas_call(
        kernel,
        out_shape=jax.ShapeDtypeStruct((pb, out_size), jnp.float32),
        grid_spec=pltpu.PrefetchScalarGridSpec(
            num_scalar_prefetch=0,
            grid=grid,
            in_specs=[
                # activation tile: indexed by the batch grid axis (double-buffered);
                # last block dim == full array dim (legal even if < 128 lanes)
                pl.BlockSpec((bb, in_size), lambda i: (i, 0)),
                # weight / bias slabs: constant block index -> VMEM-resident,
                # fetched once, not re-DMA'd per batch tile.
                # NOTE: pipeline_mode=pl.Buffered(1) would drop the dead second
                # buffer (~450 KiB f32); left at the default for compatibility
                # since VMEM is nowhere near the limit at these sizes.
                pl.BlockSpec((n_layers, LANE, LANE), lambda i: (0, 0, 0)),
                pl.BlockSpec((n_layers, 1, LANE), lambda i: (0, 0, 0)),
            ],
            out_specs=pl.BlockSpec((bb, out_size), lambda i: (i, 0)),
        ),
        compiler_params=pltpu.CompilerParams(
            # batch tiles are independent -> shard across TCs on v7x
            # TODO(synk): if xprof shows a single TC active on v7x, switch this
            # axis to pltpu.CORE_PARALLEL.
            dimension_semantics=("parallel",)),
    )(x_in, w_slab, b_slab)

    return y[:batch] if pb != batch else y


def make_params(key, sizes):
    """Deterministic PyTorch-style init: U(-1/sqrt(fan_in), 1/sqrt(fan_in))."""
    params = []
    for i in range(len(sizes) - 1):
        fan_in, fan_out = sizes[i], sizes[i + 1]
        key, kw, kb = jax.random.split(key, 3)
        bound = 1.0 / jnp.sqrt(jnp.float32(fan_in))
        w = jax.random.uniform(kw, (fan_in, fan_out), jnp.float32, -bound, bound)
        b = jax.random.uniform(kb, (fan_out,), jnp.float32, -bound, bound)
        params.append((w, b))
    return params


def reference_forward(x, params, compute_dtype=jnp.float32):
    h = x.astype(jnp.float32)
    for i, (w, b) in enumerate(params):
        h = jnp.dot(h.astype(compute_dtype), w.astype(compute_dtype),
                    preferred_element_type=jnp.float32) + b
        if i < len(params) - 1:
            h = jnp.maximum(h, LEAKY_SLOPE * h)
    return h


if __name__ == "__main__":
    # Small shapes consistent with DNNModel6.__init__.
    input_size = 32
    hidden = (64, 64, 48, 48, 32, 32)
    out_size = 8
    sizes = [input_size, *hidden, out_size]

    key = jax.random.PRNGKey(0)
    key, kx = jax.random.split(key)
    batch = 8
    x = jax.random.normal(kx, (batch, input_size), jnp.float32)
    params = make_params(key, sizes)

    # 1) small batch, f32 weights (single-tile grid, no batch padding)
    y = jax.block_until_ready(dnn6_forward(x, params))
    y_ref = reference_forward(x, params)
    assert y.shape == (batch, out_size)
    assert jnp.allclose(y, y_ref, atol=1e-4, rtol=1e-4), "f32 small-batch mismatch"

    # 2) larger, non-tile-multiple batch -> multi-step pipelined 'parallel' grid, f32
    key, kx2 = jax.random.split(key)
    big_batch = 600
    xb = jax.random.normal(kx2, (big_batch, input_size), jnp.float32)
    yb = jax.block_until_ready(dnn6_forward(xb, params, block_batch=256))
    yb_ref = reference_forward(xb, params)
    assert yb.shape == (big_batch, out_size)
    assert jnp.allclose(yb, yb_ref, atol=1e-4, rtol=1e-4), "f32 big-batch mismatch"

    # 3) bf16 weight/activation path (f32 accumulation) — recommended on v5e/v6e;
    #    default block_batch=1024 exercises the minimal-batch-padding path.
    yb16 = jax.block_until_ready(
        dnn6_forward(xb, params, param_dtype=jnp.bfloat16))
    yb16_ref = reference_forward(xb, params, compute_dtype=jnp.bfloat16)
    assert yb16.shape == (big_batch, out_size)
    assert jnp.allclose(yb16, yb16_ref, atol=2e-2, rtol=2e-2), "bf16 mismatch"

    print("KERNEL_OK")
</pallas_src>

<mosaic_0001>
module attributes {stable_mosaic.version = 11 : i64} {
  func.func @dnn6_kernel(%arg0: i32, %arg1: memref<8x32xf32, #tpu.memory_space<vmem>>, %arg2: memref<7x128x128xf32, #tpu.memory_space<vmem>>, %arg3: memref<7x1x128xf32, #tpu.memory_space<vmem>>, %arg4: memref<8x8xf32, #tpu.memory_space<vmem>>) attributes {dimension_semantics = [#tpu.dimension_semantics<parallel>], iteration_bounds = array<i64: 1>, scalar_prefetch = 0 : i64, scratch_operands = 0 : i64, tpu.core_type = #tpu.core_type<tc>, window_params = [{transform_indices = @transform_0, window_bounds = array<i64: 8, 32>}, {pipeline_mode = #tpu.pipeline_mode<synchronous>, transform_indices = @transform_1, window_bounds = array<i64: 7, 128, 128>}, {pipeline_mode = #tpu.pipeline_mode<synchronous>, transform_indices = @transform_2, window_bounds = array<i64: 7, 1, 128>}, {transform_indices = @transform_3, window_bounds = array<i64: 8, 8>}]} {
    %c0 = arith.constant 0 : index
    %c0_0 = arith.constant 0 : index
    %0 = vector.load %arg1[%c0, %c0_0] : memref<8x32xf32, #tpu.memory_space<vmem>>, vector<8x32xf32>
    %c0_1 = arith.constant 0 : index
    %c0_2 = arith.constant 0 : index
    %c0_3 = arith.constant 0 : index
    %1 = vector.load %arg2[%c0_1, %c0_2, %c0_3] : memref<7x128x128xf32, #tpu.memory_space<vmem>>, vector<1x32x128xf32>
    %2 = vector.shape_cast %1 : vector<1x32x128xf32> to vector<32x128xf32>
    %cst = arith.constant dense<0.000000e+00> : vector<8x128xf32>
    %3 = tpu.matmul %0, %2, %cst {dimension_numbers = #tpu.dot_dimension_numbers<[1], [0], [0], [1], [0, 0, 1, 1], [], []>} : vector<8x32xf32>, vector<32x128xf32>, vector<8x128xf32> -> vector<8x128xf32>
    %c0_4 = arith.constant 0 : index
    %c0_5 = arith.constant 0 : index
    %c0_6 = arith.constant 0 : index
    %4 = vector.load %arg3[%c0_4, %c0_5, %c0_6] : memref<7x1x128xf32, #tpu.memory_space<vmem>>, vector<1x1x128xf32>
    %5 = vector.shape_cast %4 : vector<1x1x128xf32> to vector<1x128xf32>
    %6 = vector.broadcast %5 : vector<1x128xf32> to vector<8x128xf32>
    %7 = arith.addf %3, %6 : vector<8x128xf32>
    %cst_7 = arith.constant 0.00999999977 : f32
    %8 = vector.broadcast %cst_7 : f32 to vector<8x128xf32>
    %9 = arith.mulf %8, %7 : vector<8x128xf32>
    %10 = arith.maximumf %7, %9 : vector<8x128xf32>
    %c1 = arith.constant 1 : index
    %c0_8 = arith.constant 0 : index
    %c0_9 = arith.constant 0 : index
    %11 = vector.load %arg2[%c1, %c0_8, %c0_9] : memref<7x128x128xf32, #tpu.memory_space<vmem>>, vector<1x128x128xf32>
    %12 = vector.shape_cast %11 : vector<1x128x128xf32> to vector<128x128xf32>
    %cst_10 = arith.constant dense<0.000000e+00> : vector<8x128xf32>
    %13 = tpu.matmul %10, %12, %cst_10 {dimension_numbers = #tpu.dot_dimension_numbers<[1], [0], [0], [1], [0, 0, 1, 1], [], []>} : vector<8x128xf32>, vector<128x128xf32>, vector<8x128xf32> -> vector<8x128xf32>
    %c1_11 = arith.constant 1 : index
    %c0_12 = arith.constant 0 : index
    %c0_13 = arith.constant 0 : index
    %14 = vector.load %arg3[%c1_11, %c0_12, %c0_13] : memref<7x1x128xf32, #tpu.memory_space<vmem>>, vector<1x1x128xf32>
    %15 = vector.shape_cast %14 : vector<1x1x128xf32> to vector<1x128xf32>
    %16 = vector.broadcast %15 : vector<1x128xf32> to vector<8x128xf32>
    %17 = arith.addf %13, %16 : vector<8x128xf32>
    %cst_14 = arith.constant 0.00999999977 : f32
    %18 = vector.broadcast %cst_14 : f32 to vector<8x128xf32>
    %19 = arith.mulf %18, %17 : vector<8x128xf32>
    %20 = arith.maximumf %17, %19 : vector<8x128xf32>
    %c2 = arith.constant 2 : index
    %c0_15 = arith.constant 0 : index
    %c0_16 = arith.constant 0 : index
    %21 = vector.load %arg2[%c2, %c0_15, %c0_16] : memref<7x128x128xf32, #tpu.memory_space<vmem>>, vector<1x128x128xf32>
    %22 = vector.shape_cast %21 : vector<1x128x128xf32> to vector<128x128xf32>
    %cst_17 = arith.constant dense<0.000000e+00> : vector<8x128xf32>
    %23 = tpu.matmul %20, %22, %cst_17 {dimension_numbers = #tpu.dot_dimension_numbers<[1], [0], [0], [1], [0, 0, 1, 1], [], []>} : vector<8x128xf32>, vector<128x128xf32>, vector<8x128xf32> -> vector<8x128xf32>
    %c2_18 = arith.constant 2 : index
    %c0_19 = arith.constant 0 : index
    %c0_20 = arith.constant 0 : index
    %24 = vector.load %arg3[%c2_18, %c0_19, %c0_20] : memref<7x1x128xf32, #tpu.memory_space<vmem>>, vector<1x1x128xf32>
    %25 = vector.shape_cast %24 : vector<1x1x128xf32> to vector<1x128xf32>
    %26 = vector.broadcast %25 : vector<1x128xf32> to vector<8x128xf32>
    %27 = arith.addf %23, %26 : vector<8x128xf32>
    %cst_21 = arith.constant 0.00999999977 : f32
    %28 = vector.broadcast %cst_21 : f32 to vector<8x128xf32>
    %29 = arith.mulf %28, %27 : vector<8x128xf32>
    %30 = arith.maximumf %27, %29 : vector<8x128xf32>
    %c3 = arith.constant 3 : index
    %c0_22 = arith.constant 0 : index
    %c0_23 = arith.constant 0 : index
    %31 = vector.load %arg2[%c3, %c0_22, %c0_23] : memref<7x128x128xf32, #tpu.memory_space<vmem>>, vector<1x128x128xf32>
    %32 = vector.shape_cast %31 : vector<1x128x128xf32> to vector<128x128xf32>
    %cst_24 = arith.constant dense<0.000000e+00> : vector<8x128xf32>
    %33 = tpu.matmul %30, %32, %cst_24 {dimension_numbers = #tpu.dot_dimension_numbers<[1], [0], [0], [1], [0, 0, 1, 1], [], []>} : vector<8x128xf32>, vector<128x128xf32>, vector<8x128xf32> -> vector<8x128xf32>
    %c3_25 = arith.constant 3 : index
    %c0_26 = arith.constant 0 : index
    %c0_27 = arith.constant 0 : index
    %34 = vector.load %arg3[%c3_25, %c0_26, %c0_27] : memref<7x1x128xf32, #tpu.memory_space<vmem>>, vector<1x1x128xf32>
    %35 = vector.shape_cast %34 : vector<1x1x128xf32> to vector<1x128xf32>
    %36 = vector.broadcast %35 : vector<1x128xf32> to vector<8x128xf32>
    %37 = arith.addf %33, %36 : vector<8x128xf32>
    %cst_28 = arith.constant 0.00999999977 : f32
    %38 = vector.broadcast %cst_28 : f32 to vector<8x128xf32>
    %39 = arith.mulf %38, %37 : vector<8x128xf32>
    %40 = arith.maximumf %37, %39 : vector<8x128xf32>
    %c4 = arith.constant 4 : index
    %c0_29 = arith.constant 0 : index
    %c0_30 = arith.constant 0 : index
    %41 = vector.load %arg2[%c4, %c0_29, %c0_30] : memref<7x128x128xf32, #tpu.memory_space<vmem>>, vector<1x128x128xf32>
    %42 = vector.shape_cast %41 : vector<1x128x128xf32> to vector<128x128xf32>
    %cst_31 = arith.constant dense<0.000000e+00> : vector<8x128xf32>
    %43 = tpu.matmul %40, %42, %cst_31 {dimension_numbers = #tpu.dot_dimension_numbers<[1], [0], [0], [1], [0, 0, 1, 1], [], []>} : vector<8x128xf32>, vector<128x128xf32>, vector<8x128xf32> -> vector<8x128xf32>
    %c4_32 = arith.constant 4 : index
    %c0_33 = arith.constant 0 : index
    %c0_34 = arith.constant 0 : index
    %44 = vector.load %arg3[%c4_32, %c0_33, %c0_34] : memref<7x1x128xf32, #tpu.memory_space<vmem>>, vector<1x1x128xf32>
    %45 = vector.shape_cast %44 : vector<1x1x128xf32> to vector<1x128xf32>
    %46 = vector.broadcast %45 : vector<1x128xf32> to vector<8x128xf32>
    %47 = arith.addf %43, %46 : vector<8x128xf32>
    %cst_35 = arith.constant 0.00999999977 : f32
    %48 = vector.broadcast %cst_35 : f32 to vector<8x128xf32>
    %49 = arith.mulf %48, %47 : vector<8x128xf32>
    %50 = arith.maximumf %47, %49 : vector<8x128xf32>
    %c5 = arith.constant 5 : index
    %c0_36 = arith.constant 0 : index
    %c0_37 = arith.constant 0 : index
    %51 = vector.load %arg2[%c5, %c0_36, %c0_37] : memref<7x128x128xf32, #tpu.memory_space<vmem>>, vector<1x128x128xf32>
    %52 = vector.shape_cast %51 : vector<1x128x128xf32> to vector<128x128xf32>
    %cst_38 = arith.constant dense<0.000000e+00> : vector<8x128xf32>
    %53 = tpu.matmul %50, %52, %cst_38 {dimension_numbers = #tpu.dot_dimension_numbers<[1], [0], [0], [1], [0, 0, 1, 1], [], []>} : vector<8x128xf32>, vector<128x128xf32>, vector<8x128xf32> -> vector<8x128xf32>
    %c5_39 = arith.constant 5 : index
    %c0_40 = arith.constant 0 : index
    %c0_41 = arith.constant 0 : index
    %54 = vector.load %arg3[%c5_39, %c0_40, %c0_41] : memref<7x1x128xf32, #tpu.memory_space<vmem>>, vector<1x1x128xf32>
    %55 = vector.shape_cast %54 : vector<1x1x128xf32> to vector<1x128xf32>
    %56 = vector.broadcast %55 : vector<1x128xf32> to vector<8x128xf32>
    %57 = arith.addf %53, %56 : vector<8x128xf32>
    %cst_42 = arith.constant 0.00999999977 : f32
    %58 = vector.broadcast %cst_42 : f32 to vector<8x128xf32>
    %59 = arith.mulf %58, %57 : vector<8x128xf32>
    %60 = arith.maximumf %57, %59 : vector<8x128xf32>
    %c6 = arith.constant 6 : index
    %c0_43 = arith.constant 0 : index
    %c0_44 = arith.constant 0 : index
    %61 = vector.load %arg2[%c6, %c0_43, %c0_44] : memref<7x128x128xf32, #tpu.memory_space<vmem>>, vector<1x128x128xf32>
    %62 = vector.shape_cast %61 : vector<1x128x128xf32> to vector<128x128xf32>
    %cst_45 = arith.constant dense<0.000000e+00> : vector<8x128xf32>
    %63 = tpu.matmul %60, %62, %cst_45 {dimension_numbers = #tpu.dot_dimension_numbers<[1], [0], [0], [1], [0, 0, 1, 1], [], []>} : vector<8x128xf32>, vector<128x128xf32>, vector<8x128xf32> -> vector<8x128xf32>
    %c6_46 = arith.constant 6 : index
    %c0_47 = arith.constant 0 : index
    %c0_48 = arith.constant 0 : index
    %64 = vector.load %arg3[%c6_46, %c0_47, %c0_48] : memref<7x1x128xf32, #tpu.memory_space<vmem>>, vector<1x1x128xf32>
    %65 = vector.shape_cast %64 : vector<1x1x128xf32> to vector<1x128xf32>
    %66 = vector.broadcast %65 : vector<1x128xf32> to vector<8x128xf32>
    %67 = arith.addf %63, %66 : vector<8x128xf32>
    %68 = vector.extract_strided_slice %67 {offsets = [0, 0], sizes = [8, 8], strides = [1, 1]} : vector<8x128xf32> to vector<8x8xf32>
    %c0_49 = arith.constant 0 : index
    %c0_50 = arith.constant 0 : index
    %69 = vector.load %arg4[%c0_49, %c0_50] : memref<8x8xf32, #tpu.memory_space<vmem>>, vector<8x8xf32>
    tpu.vector_store %arg4[%c0_49, %c0_50], %68 {strides = array<i32>} : memref<8x8xf32, #tpu.memory_space<vmem>>, vector<8x8xf32>,
    return
  }
  func.func @transform_0(%arg0: i32) -> (i32, i32) {
    %c0_i32 = arith.constant 0 : i32
    %c0_i32_0 = arith.constant 0 : i32
    return %arg0, %c0_i32 : i32, i32
  }
  func.func @transform_1(%arg0: i32) -> (i32, i32, i32) {
    %c0_i32 = arith.constant 0 : i32
    %c0_i32_0 = arith.constant 0 : i32
    %c0_i32_1 = arith.constant 0 : i32
    %c0_i32_2 = arith.constant 0 : i32
    return %c0_i32, %c0_i32_0, %c0_i32_1 : i32, i32, i32
  }
  func.func @transform_2(%arg0: i32) -> (i32, i32, i32) {
    %c0_i32 = arith.constant 0 : i32
    %c0_i32_0 = arith.constant 0 : i32
    %c0_i32_1 = arith.constant 0 : i32
    %c0_i32_2 = arith.constant 0 : i32
    return %c0_i32, %c0_i32_0, %c0_i32_1 : i32, i32, i32
  }
  func.func @transform_3(%arg0: i32) -> (i32, i32) {
    %c0_i32 = arith.constant 0 : i32
    %c0_i32_0 = arith.constant 0 : i32
    return %arg0, %c0_i32 : i32, i32
  }
}

</mosaic_0001>

<bundles_post_ra>
// kernel: tpu_custom_call.1
= control target key start
LH: loop header
LB: loop body
LE: loop exit
PB: predicated region body
PF: predicated region fallthrough
CT: control target
= control target key end

     0   :  { %8 = vsyncpa [#allocation3], 0  ;;  %s1455_s0 = inlined_call_operand.hbm [shape: f32[8,32], index: 0, kind: input, shape index: {}]   ;;  %s1456_s1 = inlined_call_operand.hbm [shape: f32[7,128,128], index: 1, kind: input, shape index: {}]   ;;  %s1457_s2 = inlined_call_operand.vmem [shape: f32[7,1,128], index: 2, kind: input, shape index: {}]   ;;  %s1458_s3 = inlined_call_operand.hbm [shape: f32[8,8], index: 3, kind: output, shape index: {}]  }
   0x1   :  { %9 = vsyncpa [#allocation6], 0 }
   0x2   :  { %10 = vsyncpa [#allocation4], 0  ;;  %s1299_s12 = smov [#allocation2]   ;;  %s1300_s14 = smov [#allocation5]  }
   0x3   :  { %s17_s13 = sshll.u32 %s1299_s12, 4  ;;  %s26_s15 = sshll.u32 %s1300_s14, 4  ;;  %s18_s13 = int_to_ptr.vmem [resolvable:$true] %s17_s13  ;;  %s1327_s15 = int_to_ptr.vmem [resolvable:$true] %s26_s15 }
   0x4   :  { %s1227_s18 = scalar_lea.hbm %s1455_s0, 128 }
   0x5   :  { %p1228_p0 = scmp.ne.s32.totalorder %s1455_s0, %s1227_s18  ;;  %p1231_p1 = scmp.lt.u32.totalorder %s1227_s18, %s1455_s0 }
   0x7   :  { %p1233_p2 = pnand %p1231_p1, %p1228_p0 }
   0x9   :  { %1236 = shalt.err (!%p1233_p2)
}
   0xa   :  { %s1237_s23 = scalar_lea.vmem %s18_s13, 128  ;;  %p1242_p4 = scmp.lt.s32.totalorder %s18_s13, %s18_s13 }
   0xb   :  { %p1238_p3 = scmp.ne.s32.totalorder %s18_s13, %s1237_s23  ;;  %p1243_p5 = scmp.lt.s32.totalorder %s1237_s23, %s1237_s23 }
   0xd   :  { %p1244_p6 = por %p1243_p5, %p1242_p4 }
   0xf   :  { %p1245_p7 = pnand %p1244_p6, %p1238_p3 }
  0x11   :  { %1248 = shalt.err (!%p1245_p7)
}
  0x12   :  { %20 = dma.hbm_to_vmem [thread:$0]  %s1455_s0, 128, %s18_s13, [#allocation3]  }
  0x13   :  { %s1249_s28 = scalar_lea.hbm %s1456_s1, 14336 }
  0x14   :  { %p1250_p8 = scmp.ne.s32.totalorder %s1456_s1, %s1249_s28  ;;  %p1253_p9 = scmp.lt.u32.totalorder %s1249_s28, %s1456_s1 }
  0x16   :  { %p1255_p10 = pnand %p1253_p9, %p1250_p8 }
  0x18   :  { %1258 = shalt.err (!%p1255_p10)
}
  0x19   :  { %s1259_s6 = scalar_lea.vmem %s1327_s15, 14336  ;;  %p1264_p12 = scmp.lt.s32.totalorder %s1327_s15, %s1327_s15 }
  0x1a   :  { %p1260_p11 = scmp.ne.s32.totalorder %s1327_s15, %s1259_s6  ;;  %p1265_p13 = scmp.lt.s32.totalorder %s1259_s6, %s1259_s6 }
  0x1c   :  { %p1266_p0 = por %p1265_p13, %p1264_p12 }
  0x1e   :  { %p1267_p1 = pnand %p1266_p0, %p1260_p11 }
  0x20   :  { %1270 = shalt.err (!%p1267_p1)
}
  0x21   :  { %s1301_s0 = smov 128   ;;  %s1302_s7 = smov 8  }
  0x22   :  { %32 = dma.hbm_to_vmem [thread:$0]  %s1456_s1, 14336, %s1327_s15, [#allocation6], %s1301_s0, %s1301_s0, %s1302_s7  }
  0x23   :  { %1293 = dma.done.wait [#allocation3], 128  }
  0x24   :  { %1294 = vsyncadd [#allocation3], 4294967168 }
  0x25   :  { %1295 = dma.done.wait [#allocation6], 14336  }
  0x26   :  { %1296 = vsyncadd [#allocation6], 4294952960  ;;  %v1303_v0 = vmov 0.0|0.0   ;;  %vm1304_vm0 = vmmov 0   ;;  %v1305_v1 = vmov 0.0   ;;  %v42_v2 = vld [vmem:[#allocation5] sm:$0xff] }
  0x27   :  { %1069 = vmatprep.subr.bf16.mxu0 %v1303_v0  ;;  %856 = vmatprep.mubr.msk.f32.mxu0 %vm1304_vm0, %v1305_v1  ;;  %v43_v3 = vld [vmem:[#allocation5 + $0x8] sm:$0xff]  ;;  %v44_v4 = vld [vmem:[#allocation5 + $0x10] sm:$0xff]  ;;  %v45_v6 = vld [vmem:[#allocation5 + $0x18] sm:$0xff]  ;;  %vm53_vm1 = vcmask 261120   ;;  %s1306_s23 = smov [#allocation7]   ;;  %vm709_vm2 = vcmask 64512  }
  0x28   :  { %1075 = vmatprep.subr.bf16.mxu1 %v1303_v0  ;;  %891 = vmatprep.mubr.msk.f32.mxu1 %vm1304_vm0, %v1305_v1  ;;  %v1070_v5 = vpack.c.bf16 %v43_v3, %v42_v2  ;;  %v130_v7 = vld [vmem:[#allocation5 + $0x80] sm:$0xff]  ;;  %v131_v8 = vld [vmem:[#allocation5 + $0x88] sm:$0xff]  ;;  %v132_v9 = vld [vmem:[#allocation5 + $0x90] sm:$0xff]  ;;  %v1073_v11 = vpack.c.bf16 %v45_v6, %v44_v4  ;;  %s717_s24 = sshll.u32 %s1306_s23, 4  ;;  %s718_s24 = int_to_ptr.vmem [resolvable:$true] %s717_s24 }
  0x29   :  { %v133_v10 = vld [vmem:[#allocation5 + $0x98] sm:$0xff]  ;;  %v1076_v12 = vpack.c.bf16 %v131_v8, %v130_v7  ;;  %v134_v14 = vld [vmem:[#allocation5 + $0xa0] sm:$0xff]  ;;  %v135_v15 = vld [vmem:[#allocation5 + $0xa8] sm:$0xff]  ;;  %s1271_s25 = scalar_lea.vmem %s718_s24, 128  ;;  %p1276_p3 = scmp.lt.s32.totalorder %s718_s24, %s718_s24 }
  0x2a   :  { %1071 = vmatpush3.bf16.msra.mxu0 %v1070_v5  ;;  %v1079_v13 = vpack.c.bf16 %v133_v10, %v132_v9  ;;  %v41_v16 = vld [vmem:[#allocation2] sm:$0xff]  ;;  %v1082_v17 = vpack.c.bf16 %v135_v15, %v134_v14  ;;  %v136_v18 = vld [vmem:[#allocation5 + $0xb0] sm:$0xff]  ;;  %v138_v21 = vld [vmem:[#allocation5 + $0xc0] sm:$0xff]  ;;  %p1272_p2 = scmp.ne.s32.totalorder %s718_s24, %s1271_s25  ;;  %p1277_p4 = scmp.lt.s32.totalorder %s1271_s25, %s1271_s25 }
  0x2b   :  { %1072 = vmatprep.subr.bf16.mxu0 %v1303_v0  ;;  %1077 = vmatpush3.bf16.msra.mxu1 %v1076_v12  ;;  %v137_v19 = vld [vmem:[#allocation5 + $0xb8] sm:$0xff]  ;;  %v139_v22 = vld [vmem:[#allocation5 + $0xc8] sm:$0xff]  ;;  %v140_v24 = vld [vmem:[#allocation5 + $0xd0] sm:$0xff] }
  0x2c   :  { %1078 = vmatprep.subr.bf16.mxu1 %v1303_v0  ;;  %v1085_v20 = vpack.c.bf16 %v137_v19, %v136_v18  ;;  %v1088_v23 = vpack.c.bf16 %v139_v22, %v138_v21  ;;  %v141_v25 = vld [vmem:[#allocation5 + $0xd8] sm:$0xff]  ;;  %v142_v27 = vld [vmem:[#allocation5 + $0xe0] sm:$0xff]  ;;  %v143_v28 = vld [vmem:[#allocation5 + $0xe8] sm:$0xff]  ;;  %p1278_p5 = por %p1277_p4, %p1276_p3 }
  0x2d   :  { %v1091_v26 = vpack.c.bf16 %v141_v25, %v140_v24  ;;  %v1094_v29 = vpack.c.bf16 %v143_v28, %v142_v27  ;;  %v144_v30 = vld [vmem:[#allocation5 + $0xf0] sm:$0xff]  ;;  %v145_v31 = vld [vmem:[#allocation5 + $0xf8] sm:$0xff]  ;;  %v227_v33 = vld [vmem:[#allocation5 + $0x100] sm:$0xff] }
  0x2e   :  { %1074 = vmatpush3.bf16.msra.mxu0 %v1073_v11  ;;  %v1097_v32 = vpack.c.bf16 %v145_v31, %v144_v30  ;;  %v228_v34 = vld [vmem:[#allocation5 + $0x108] sm:$0xff]  ;;  %v229_v35 = vld [vmem:[#allocation5 + $0x110] sm:$0xff]  ;;  %v230_v37 = vld [vmem:[#allocation5 + $0x118] sm:$0xff]  ;;  %p1279_p6 = pnand %p1278_p5, %p1272_p2 }
  0x2f   :  { %1099 = vmatprep.subr.bf16.mxu0 %v1303_v0  ;;  %1080 = vmatpush3.bf16.msra.mxu1 %v1079_v13  ;;  %v1100_v36 = vpack.c.bf16 %v228_v34, %v227_v33  ;;  %v1103_v38 = vpack.c.bf16 %v230_v37, %v229_v35  ;;  %v231_v39 = vld [vmem:[#allocation5 + $0x120] sm:$0xff]  ;;  %v232_v40 = vld [vmem:[#allocation5 + $0x128] sm:$0xff]  ;;  %v233_v42 = vld [vmem:[#allocation5 + $0x130] sm:$0xff] }
  0x30   :  { %1081 = vmatprep.subr.bf16.mxu1 %v1303_v0  ;;  %v1106_v41 = vpack.c.bf16 %v232_v40, %v231_v39  ;;  %v234_v43 = vld [vmem:[#allocation5 + $0x138] sm:$0xff]  ;;  %v235_v45 = vld [vmem:[#allocation5 + $0x140] sm:$0xff]  ;;  %v236_v46 = vld [vmem:[#allocation5 + $0x148] sm:$0xff] }
  0x31   :  { %857 = vmatmul.mubr.msk.f32.vlgmr.msra.gmra.mrb[0].mxu0 %vm53_vm1, %v41_v16  ;;  %v1109_v44 = vpack.c.bf16 %v234_v43, %v233_v42  ;;  %v1112_v47 = vpack.c.bf16 %v236_v46, %v235_v45  ;;  %v237_v48 = vld [vmem:[#allocation5 + $0x150] sm:$0xff]  ;;  %v238_v49 = vld [vmem:[#allocation5 + $0x158] sm:$0xff]  ;;  %v239_v57 = vld [vmem:[#allocation5 + $0x160] sm:$0xff] }
  0x32   :  { %926 = vmatprep.mubr.msk.f32.mxu0 %vm1304_vm0, %v1305_v1  ;;  %1101 = vmatpush3.bf16.msra.mxu0 %v1100_v36  ;;  %v1115_v50 = vpack.c.bf16 %v238_v49, %v237_v48  ;;  %v727_v51 = vld [vmem:[%s1457_s2] ss:$0 sm:$0xff]  ;;  %v240_v58 = vld [vmem:[#allocation5 + $0x168] sm:$0xff]  ;;  %v241_v60 = vld [vmem:[#allocation5 + $0x170] sm:$0xff] }
  0x33   :  { %1083 = vmatpush3.bf16.msra.mxu1 %v1082_v17  ;;  %1102 = vmatprep.subr.bf16.mxu0 %v1303_v0  ;;  %v1118_v59 = vpack.c.bf16 %v240_v58, %v239_v57  ;;  %v242_v61 = vld [vmem:[#allocation5 + $0x178] sm:$0xff]  ;;  %v324_v63 = vld [vmem:[#allocation5 + $0x180] sm:$0xff]  ;;  %v325_v2 = vld [vmem:[#allocation5 + $0x188] sm:$0xff] }
  0x34   :  { %1084 = vmatprep.subr.bf16.mxu1 %v1303_v0  ;;  %v1121_v62 = vpack.c.bf16 %v242_v61, %v241_v60  ;;  %v326_v3 = vld [vmem:[#allocation5 + $0x190] sm:$0xff]  ;;  %v1124_v4 = vpack.c.bf16 %v325_v2, %v324_v63  ;;  %v327_v5 = vld [vmem:[#allocation5 + $0x198] sm:$0xff]  ;;  %v328_v7 = vld [vmem:[#allocation5 + $0x1a0] sm:$0xff] }
  0x35   :  { %v1127_v6 = vpack.c.bf16 %v327_v5, %v326_v3  ;;  %v329_v8 = vld [vmem:[#allocation5 + $0x1a8] sm:$0xff]  ;;  %v330_v10 = vld [vmem:[#allocation5 + $0x1b0] sm:$0xff]  ;;  %v331_v11 = vld [vmem:[#allocation5 + $0x1b8] sm:$0xff] }
  0x36   :  { %1104 = vmatpush3.bf16.msra.mxu0 %v1103_v38  ;;  %v1130_v9 = vpack.c.bf16 %v329_v8, %v328_v7  ;;  %v1133_v12 = vpack.c.bf16 %v331_v11, %v330_v10  ;;  %v332_v13 = vld [vmem:[#allocation5 + $0x1c0] sm:$0xff]  ;;  %v333_v14 = vld [vmem:[#allocation5 + $0x1c8] sm:$0xff]  ;;  %v334_v16 = vld [vmem:[#allocation5 + $0x1d0] sm:$0xff] }
  0x37   :  { %1086 = vmatpush3.bf16.msra.mxu1 %v1085_v20  ;;  %1105 = vmatprep.subr.bf16.mxu0 %v1303_v0  ;;  %v1136_v15 = vpack.c.bf16 %v333_v14, %v332_v13  ;;  %v335_v17 = vld [vmem:[#allocation5 + $0x1d8] sm:$0xff]  ;;  %v336_v25 = vld [vmem:[#allocation5 + $0x1e0] sm:$0xff]  ;;  %v338_v28 = vld [vmem:[#allocation5 + $0x1f0] sm:$0xff] }
  0x38   :  { %1087 = vmatprep.subr.bf16.mxu1 %v1303_v0  ;;  %v1139_v18 = vpack.c.bf16 %v335_v17, %v334_v16  ;;  %v730_v19 = vld [vmem:[%s1457_s2 + $0x1] ss:$0 sm:$0xff]  ;;  %v421_v31 = vld [vmem:[#allocation5 + $0x200] sm:$0xff]  ;;  %v423_v33 = vld [vmem:[#allocation5 + $0x210] sm:$0xff] }
  0x39   :  { %v424_v35 = vld [vmem:[#allocation5 + $0x218] sm:$0xff]  ;;  %v425_v37 = vld [vmem:[#allocation5 + $0x220] sm:$0xff]  ;;  %v426_v38 = vld [vmem:[#allocation5 + $0x228] sm:$0xff] }
  0x3a   :  { %1107 = vmatpush3.bf16.msra.mxu0 %v1106_v41  ;;  %v1151_v36 = vpack.c.bf16 %v424_v35, %v423_v33  ;;  %v1154_v39 = vpack.c.bf16 %v426_v38, %v425_v37  ;;  %v427_v40 = vld [vmem:[#allocation5 + $0x230] sm:$0xff]  ;;  %v428_v41 = vld [vmem:[#allocation5 + $0x238] sm:$0xff]  ;;  %v429_v43 = vld [vmem:[#allocation5 + $0x240] sm:$0xff] }
  0x3b   :  { %1089 = vmatpush3.bf16.msra.mxu1 %v1088_v23  ;;  %1108 = vmatprep.subr.bf16.mxu0 %v1303_v0  ;;  %v1157_v42 = vpack.c.bf16 %v428_v41, %v427_v40  ;;  %v431_v46 = vld [vmem:[#allocation5 + $0x250] sm:$0xff]  ;;  %v732_v49 = vld [vmem:[%s1457_s2 + $0x2] ss:$0 sm:$0xff]  ;;  %v518_v61 = vld [vmem:[#allocation5 + $0x280] sm:$0xff] }
  0x3c   :  { %1090 = vmatprep.subr.bf16.mxu1 %v1303_v0  ;;  %v435_v58 = vld [vmem:[#allocation5 + $0x270] sm:$0xff]  ;;  %v521_v3 = vld [vmem:[#allocation5 + $0x298] sm:$0xff]  ;;  %v522_v5 = vld [vmem:[#allocation5 + $0x2a0] sm:$0xff] }
  0x3d   :  { %v520_v63 = vld [vmem:[#allocation5 + $0x290] sm:$0xff]  ;;  %v526_v11 = vld [vmem:[#allocation5 + $0x2c0] sm:$0xff]  ;;  %v734_v17 = vld [vmem:[%s1457_s2 + $0x3] ss:$0 sm:$0xff] }
  0x3e   :  { %1110 = vmatpush3.bf16.msra.mxu0 %v1109_v44  ;;  %v430_v44 = vld [vmem:[#allocation5 + $0x248] sm:$0xff]  ;;  %v524_v8 = vld [vmem:[#allocation5 + $0x2b0] sm:$0xff]  ;;  %v618_v33 = vld [vmem:[#allocation5 + $0x318] sm:$0xff] }
  0x3f   :  { %1092 = vmatpush3.bf16.msra.mxu1 %v1091_v26  ;;  %1111 = vmatprep.subr.bf16.mxu0 %v1303_v0  ;;  %v337_v26 = vld [vmem:[#allocation5 + $0x1e8] sm:$0xff]  ;;  %v1160_v45 = vpack.c.bf16 %v430_v44, %v429_v43  ;;  %v528_v14 = vld [vmem:[#allocation5 + $0x2d0] sm:$0xff]  ;;  %v622_v38 = vld [vmem:[#allocation5 + $0x338] sm:$0xff] }
  0x40   :  { %1093 = vmatprep.subr.bf16.mxu1 %v1303_v0  ;;  %v1142_v27 = vpack.c.bf16 %v337_v26, %v336_v25  ;;  %v532_v26 = vld [vmem:[#allocation5 + $0x2f0] sm:$0xff]  ;;  %v620_v35 = vld [vmem:[#allocation5 + $0x328] sm:$0xff]  ;;  %v623_v40 = vld [vmem:[#allocation5 + $0x340] sm:$0xff] }
  0x41   :  { %v621_v37 = vld [vmem:[#allocation5 + $0x330] sm:$0xff]  ;;  %v624_v41 = vld [vmem:[#allocation5 + $0x348] sm:$0xff]  ;;  %v626_v44 = vld [vmem:[#allocation5 + $0x358] sm:$0xff] }
  0x42   :  { %1113 = vmatpush3.bf16.msra.mxu0 %v1112_v47  ;;  %v432_v47 = vld [vmem:[#allocation5 + $0x258] sm:$0xff]  ;;  %v625_v43 = vld [vmem:[#allocation5 + $0x350] sm:$0xff] }
  0x43   :  { %1095 = vmatpush3.bf16.msra.mxu1 %v1094_v29  ;;  %1114 = vmatprep.subr.bf16.mxu0 %v1303_v0  ;;  %v339_v29 = vld [vmem:[#allocation5 + $0x1f8] sm:$0xff]  ;;  %v1163_v48 = vpack.c.bf16 %v432_v47, %v431_v46 }
  0x44   :  { %1096 = vmatprep.subr.bf16.mxu1 %v1303_v0  ;;  %v1145_v30 = vpack.c.bf16 %v339_v29, %v338_v28  ;;  %v615_v29 = vld [vmem:[#allocation5 + $0x300] sm:$0xff]  ;;  %v736_v46 = vld [vmem:[%s1457_s2 + $0x4] ss:$0 sm:$0xff] }
  0x46   :  { %1116 = vmatpush3.bf16.msra.mxu0 %v1115_v50 }
  0x47   :  { %1098 = vmatpush3.bf16.msra.mxu1 %v1097_v32  ;;  %1117 = vmatprep.subr.bf16.mxu0 %v1303_v0  ;;  %v422_v32 = vld [vmem:[#allocation5 + $0x208] sm:$0xff] }
  0x48   :  { %1123 = vmatprep.subr.bf16.mxu1 %v1303_v0  ;;  %v1148_v34 = vpack.c.bf16 %v422_v32, %v421_v31  ;;  %v617_v31 = vld [vmem:[#allocation5 + $0x310] sm:$0xff] }
  0x4a   :  { %1119 = vmatpush3.bf16.msra.mxu0 %v1118_v59  ;;  %v436_v59 = vld [vmem:[#allocation5 + $0x278] sm:$0xff] }
  0x4b   :  { %1120 = vmatprep.subr.bf16.mxu0 %v1303_v0  ;;  %v1169_v60 = vpack.c.bf16 %v436_v59, %v435_v58  ;;  %v738_v58 = vld [vmem:[%s1457_s2 + $0x5] ss:$0 sm:$0xff] }
  0x4e   :  { %1122 = vmatpush3.bf16.msra.mxu0 %v1121_v62  ;;  %v519_v62 = vld [vmem:[#allocation5 + $0x288] sm:$0xff] }
  0x4f   :  { %1147 = vmatprep.subr.bf16.mxu0 %v1303_v0  ;;  %v1172_v2 = vpack.c.bf16 %v519_v62, %v518_v61 }
 0x104   :  { %v123_v52 = vpop.f32.mrb[0].mxu0 }
 0x105   :  { %v124_v53 = vadd.f32 %v727_v51, %v123_v52  ;;  %v858_v54 = vpop.f32.mrb[1].mxu0 }
 0x107   :  { %v127_v55 = vmul.f32 0.01, %v124_v53 }
 0x109   :  { %v128_v56 = vmax.f32 %v124_v53, %v127_v55  ;;  %v433_v55 = vld [vmem:[#allocation5 + $0x260] sm:$0xff] }
 0x10b   :  { %892 = vmatmul.mubr.f32.vlgmr.msra.gmra.mrb[0].mxu1 %v128_v56  ;;  %v434_v56 = vld [vmem:[#allocation5 + $0x268] sm:$0xff] }
 0x10c   :  { %961 = vmatprep.mubr.msk.f32.mxu1 %vm1304_vm0, %v1305_v1  ;;  %1125 = vmatpush3.bf16.msra.mxu1 %v1124_v4  ;;  %v1166_v57 = vpack.c.bf16 %v434_v56, %v433_v55  ;;  %v1175_v4 = vpack.c.bf16 %v521_v3, %v520_v63  ;;  %v629_v55 = vld [vmem:[#allocation5 + $0x370] sm:$0xff]  ;;  %v630_v56 = vld [vmem:[#allocation5 + $0x378] sm:$0xff] }
 0x10d   :  { %1126 = vmatprep.subr.bf16.mxu1 %v1303_v0 }
 0x110   :  { %1128 = vmatpush3.bf16.msra.mxu1 %v1127_v6  ;;  %v523_v6 = vld [vmem:[#allocation5 + $0x2a8] sm:$0xff] }
 0x111   :  { %1129 = vmatprep.subr.bf16.mxu1 %v1303_v0  ;;  %v1178_v7 = vpack.c.bf16 %v523_v6, %v522_v5 }
 0x114   :  { %1131 = vmatpush3.bf16.msra.mxu1 %v1130_v9  ;;  %v525_v9 = vld [vmem:[#allocation5 + $0x2b8] sm:$0xff] }
 0x115   :  { %1132 = vmatprep.subr.bf16.mxu1 %v1303_v0  ;;  %v1181_v10 = vpack.c.bf16 %v525_v9, %v524_v8 }
 0x118   :  { %1134 = vmatpush3.bf16.msra.mxu1 %v1133_v12  ;;  %v527_v12 = vld [vmem:[#allocation5 + $0x2c8] sm:$0xff] }
 0x119   :  { %1135 = vmatprep.subr.bf16.mxu1 %v1303_v0  ;;  %v1184_v13 = vpack.c.bf16 %v527_v12, %v526_v11 }
 0x11c   :  { %1137 = vmatpush3.bf16.msra.mxu1 %v1136_v15  ;;  %v529_v15 = vld [vmem:[#allocation5 + $0x2d8] sm:$0xff] }
 0x11d   :  { %1138 = vmatprep.subr.bf16.mxu1 %v1303_v0  ;;  %v1187_v16 = vpack.c.bf16 %v529_v15, %v528_v14 }
 0x120   :  { %1140 = vmatpush3.bf16.msra.mxu1 %v1139_v18 }
 0x121   :  { %1141 = vmatprep.subr.bf16.mxu1 %v1303_v0 }
 0x124   :  { %1143 = vmatpush3.bf16.msra.mxu1 %v1142_v27  ;;  %v533_v27 = vld [vmem:[#allocation5 + $0x2f8] sm:$0xff] }
 0x125   :  { %1144 = vmatprep.subr.bf16.mxu1 %v1303_v0  ;;  %v1193_v28 = vpack.c.bf16 %v533_v27, %v532_v26 }
 0x128   :  { %1146 = vmatpush3.bf16.msra.mxu1 %v1145_v30  ;;  %v616_v30 = vld [vmem:[#allocation5 + $0x308] sm:$0xff] }
 0x129   :  { %1171 = vmatprep.subr.bf16.mxu1 %v1303_v0  ;;  %v1196_v32 = vpack.c.bf16 %v616_v30, %v615_v29 }
 0x1de   :  { %v220_v20 = vpop.f32.mrb[0].mxu1 }
 0x1df   :  { %v221_v21 = vadd.f32 %v730_v19, %v220_v20  ;;  %v893_v22 = vpop.f32.mrb[1].mxu1 }
 0x1e1   :  { %v224_v23 = vmul.f32 0.01, %v221_v21 }
 0x1e3   :  { %v225_v24 = vmax.f32 %v221_v21, %v224_v23  ;;  %v530_v23 = vld [vmem:[#allocation5 + $0x2e0] sm:$0xff] }
 0x1e5   :  { %927 = vmatmul.mubr.f32.vlgmr.msra.gmra.mrb[2].mxu0 %v225_v24  ;;  %v531_v24 = vld [vmem:[#allocation5 + $0x2e8] sm:$0xff] }
 0x1e6   :  { %996 = vmatprep.mubr.msk.f32.mxu0 %vm1304_vm0, %v1305_v1  ;;  %1149 = vmatpush3.bf16.msra.mxu0 %v1148_v34  ;;  %v1190_v25 = vpack.c.bf16 %v531_v24, %v530_v23  ;;  %v1199_v34 = vpack.c.bf16 %v618_v33, %v617_v31 }
 0x1e7   :  { %1150 = vmatprep.subr.bf16.mxu0 %v1303_v0 }
 0x1ea   :  { %1152 = vmatpush3.bf16.msra.mxu0 %v1151_v36 }
 0x1eb   :  { %1153 = vmatprep.subr.bf16.mxu0 %v1303_v0 }
 0x1ee   :  { %1155 = vmatpush3.bf16.msra.mxu0 %v1154_v39  ;;  %v1205_v39 = vpack.c.bf16 %v622_v38, %v621_v37 }
 0x1ef   :  { %1156 = vmatprep.subr.bf16.mxu0 %v1303_v0 }
 0x1f2   :  { %1158 = vmatpush3.bf16.msra.mxu0 %v1157_v42  ;;  %v1208_v42 = vpack.c.bf16 %v624_v41, %v623_v40 }
 0x1f3   :  { %1159 = vmatprep.subr.bf16.mxu0 %v1303_v0 }
 0x1f6   :  { %1161 = vmatpush3.bf16.msra.mxu0 %v1160_v45  ;;  %v1211_v45 = vpack.c.bf16 %v626_v44, %v625_v43 }
 0x1f7   :  { %1162 = vmatprep.subr.bf16.mxu0 %v1303_v0 }
 0x1fa   :  { %1164 = vmatpush3.bf16.msra.mxu0 %v1163_v48 }
 0x1fb   :  { %1165 = vmatprep.subr.bf16.mxu0 %v1303_v0 }
 0x1fe   :  { %1167 = vmatpush3.bf16.msra.mxu0 %v1166_v57  ;;  %v1217_v57 = vpack.c.bf16 %v630_v56, %v629_v55 }
 0x1ff   :  { %1168 = vmatprep.subr.bf16.mxu0 %v1303_v0 }
 0x202   :  { %1170 = vmatpush3.bf16.msra.mxu0 %v1169_v60 }
 0x203   :  { %1195 = vmatprep.subr.bf16.mxu0 %v1303_v0 }
 0x2b8   :  { %v317_v50 = vpop.f32.mrb[2].mxu0 }
 0x2b9   :  { %v318_v51 = vadd.f32 %v732_v49, %v317_v50  ;;  %v928_v52 = vpop.f32.mrb[3].mxu0 }
 0x2ba   :  { %v627_v52 = vld [vmem:[#allocation5 + $0x360] sm:$0xff] }
 0x2bb   :  { %v321_v53 = vmul.f32 0.01, %v318_v51 }
 0x2bd   :  { %v322_v54 = vmax.f32 %v318_v51, %v321_v53  ;;  %v628_v53 = vld [vmem:[#allocation5 + $0x368] sm:$0xff] }
 0x2bf   :  { %962 = vmatmul.mubr.f32.vlgmr.msra.gmra.mrb[2].mxu1 %v322_v54  ;;  %v1214_v54 = vpack.c.bf16 %v628_v53, %v627_v52 }
 0x2c0   :  { %1031 = vmatprep.mubr.msk.f32.mxu1 %vm1304_vm0, %v1305_v1  ;;  %1173 = vmatpush3.bf16.msra.mxu1 %v1172_v2  ;;  %v740_v2 = vld [vmem:[%s1457_s2 + $0x6] ss:$0 sm:$0xff] }
 0x2c1   :  { %1174 = vmatprep.subr.bf16.mxu1 %v1303_v0 }
 0x2c4   :  { %1176 = vmatpush3.bf16.msra.mxu1 %v1175_v4 }
 0x2c5   :  { %1177 = vmatprep.subr.bf16.mxu1 %v1303_v0 }
 0x2c8   :  { %1179 = vmatpush3.bf16.msra.mxu1 %v1178_v7 }
 0x2c9   :  { %1180 = vmatprep.subr.bf16.mxu1 %v1303_v0 }
 0x2cc   :  { %1182 = vmatpush3.bf16.msra.mxu1 %v1181_v10 }
 0x2cd   :  { %1183 = vmatprep.subr.bf16.mxu1 %v1303_v0 }
 0x2d0   :  { %1185 = vmatpush3.bf16.msra.mxu1 %v1184_v13 }
 0x2d1   :  { %1186 = vmatprep.subr.bf16.mxu1 %v1303_v0 }
 0x2d4   :  { %1188 = vmatpush3.bf16.msra.mxu1 %v1187_v16 }
 0x2d5   :  { %1189 = vmatprep.subr.bf16.mxu1 %v1303_v0 }
 0x2d8   :  { %1191 = vmatpush3.bf16.msra.mxu1 %v1190_v25 }
 0x2d9   :  { %1192 = vmatprep.subr.bf16.mxu1 %v1303_v0 }
 0x2dc   :  { %1194 = vmatpush3.bf16.msra.mxu1 %v1193_v28 }
 0x392   :  { %v414_v18 = vpop.f32.mrb[2].mxu1 }
 0x393   :  { %v415_v19 = vadd.f32 %v734_v17, %v414_v18  ;;  %v963_v20 = vpop.f32.mrb[3].mxu1 }
 0x395   :  { %v418_v21 = vmul.f32 0.01, %v415_v19 }
 0x397   :  { %v419_v22 = vmax.f32 %v415_v19, %v418_v21 }
 0x399   :  { %997 = vmatmul.mubr.f32.vlgmr.msra.gmra.mrb[4].mxu0 %v419_v22 }
 0x39a   :  { %1066 = vmatprep.mubr.msk.f32.mxu0 %vm1304_vm0, %v1305_v1  ;;  %1197 = vmatpush3.bf16.msra.mxu0 %v1196_v32  ;;  %v619_v1 = vld [vmem:[#allocation5 + $0x320] sm:$0xff] }
 0x39b   :  { %1198 = vmatprep.subr.bf16.mxu0 %v1303_v0  ;;  %v1202_v36 = vpack.c.bf16 %v620_v35, %v619_v1 }
 0x39e   :  { %1200 = vmatpush3.bf16.msra.mxu0 %v1199_v34 }
 0x39f   :  { %1201 = vmatprep.subr.bf16.mxu0 %v1303_v0 }
 0x3a2   :  { %1203 = vmatpush3.bf16.msra.mxu0 %v1202_v36 }
 0x3a3   :  { %1204 = vmatprep.subr.bf16.mxu0 %v1303_v0 }
 0x3a6   :  { %1206 = vmatpush3.bf16.msra.mxu0 %v1205_v39 }
 0x3a7   :  { %1207 = vmatprep.subr.bf16.mxu0 %v1303_v0 }
 0x3aa   :  { %1209 = vmatpush3.bf16.msra.mxu0 %v1208_v42 }
 0x3ab   :  { %1210 = vmatprep.subr.bf16.mxu0 %v1303_v0 }
 0x3ae   :  { %1212 = vmatpush3.bf16.msra.mxu0 %v1211_v45 }
 0x3af   :  { %1213 = vmatprep.subr.bf16.mxu0 %v1303_v0 }
 0x3b2   :  { %1215 = vmatpush3.bf16.msra.mxu0 %v1214_v54 }
 0x3b3   :  { %1216 = vmatprep.subr.bf16.mxu0 %v1303_v0 }
 0x3b6   :  { %1218 = vmatpush3.bf16.msra.mxu0 %v1217_v57 }
 0x46c   :  { %v511_v47 = vpop.f32.mrb[4].mxu0 }
 0x46d   :  { %v512_v48 = vadd.f32 %v736_v46, %v511_v47  ;;  %v998_v49 = vpop.f32.mrb[5].mxu0 }
 0x46f   :  { %v515_v50 = vmul.f32 0.01, %v512_v48 }
 0x471   :  { %v516_v51 = vmax.f32 %v512_v48, %v515_v50 }
 0x473   :  { %1032 = vmatmul.mubr.f32.vlgmr.msra.gmra.mrb[4].mxu1 %v516_v51 }
 0x546   :  { %v608_v59 = vpop.f32.mrb[4].mxu1 }
 0x547   :  { %v609_v60 = vadd.f32 %v738_v58, %v608_v59  ;;  %v1033_v61 = vpop.f32.mrb[5].mxu1 }
 0x549   :  { %v612_v62 = vmul.f32 0.01, %v609_v60 }
 0x54b   :  { %v613_v63 = vmax.f32 %v609_v60, %v612_v62 }
 0x54d   :  { %1067 = vmatmul.mubr.f32.vlgmr.msra.gmra.mrb[6].mxu0 %v613_v63 }
 0x620   :  { %v705_v0 = vpop.f32.mrb[6].mxu0 }
 0x621   :  { %v706_v3 = vadd.f32 %v740_v2, %v705_v0  ;;  %v1068_v4 = vpop.f32.mrb[7].mxu0 }
 0x623   :  { %710 = vst.msk [vmem:[#allocation7] sm:$0xff] %vm709_vm2, %v706_v3 }
 0x624   :  { %1282 = shalt.err (!%p1279_p6)
}
 0x625   :  { %s1283_s28 = scalar_lea.hbm %s1458_s3, 128 }
 0x626   :  { %p1284_p7 = scmp.ne.s32.totalorder %s1458_s3, %s1283_s28  ;;  %p1287_p8 = scmp.lt.u32.totalorder %s1283_s28, %s1458_s3 }
 0x628   :  { %p1289_p9 = pnand %p1287_p8, %p1284_p7 }
 0x62a   :  { %1292 = shalt.err (!%p1289_p9)
}
 0x62b   :  { %720 = dma.vmem_to_hbm [thread:$0]  %s718_s24, 128, %s1458_s3, [#allocation4]  }
 0x62c   :  { %1297 = dma.done.wait [#allocation4], 128  }
 0x62d   :  { %1298 = vsyncadd [#allocation4], 4294967168 }
 0x62e   :  { %724 = vsyncpa [#allocation3], 1 }
 0x62f   :  { %725 = vsyncpa [#allocation6], 1 }
 0x630   :  { %726 = vsyncpa [#allocation4], 1 }

</bundles_post_ra>
